<compile_context>
chip_gen: v5e
topology: v5e:2x2
jax: 0.10.0
libtpu: 0.0.40
codegen_flags: <defaults>
</compile_context>

<pallas_src>
import functools

import jax
import jax.numpy as jnp
from jax.experimental import pallas as pl
from jax.experimental.pallas import tpu as pltpu


def make_divisible(value, divisor, min_value=None, min_ratio=0.9):
    if min_value is None:
        min_value = divisor
    new_value = max(min_value, int(value + divisor / 2) // divisor * divisor)
    if new_value < min_ratio * value:
        new_value += divisor
    return new_value


# ---------------------------------------------------------------------------
# Kernels
# ---------------------------------------------------------------------------

def _hsigmoid(x):
    # HSigmoid(bias=3, divisor=6): multiply by 1/6 (VALU) instead of dividing.
    return jnp.clip((x + 3.0) * (1.0 / 6.0), 0.0, 1.0)


def _fused_conv_kernel(x_ref, w1t_ref, b1c_ref, w2t_ref, b2c_ref,
                       w3t_ref, b3c_ref, out_ref, *, inv_hw):
    """Whole SE layer for one batch element (conv_last path).  x read once.

    x_ref: (1, C, HW); weights column-oriented (w1t: (mid,C), w2t: (C,mid));
    w3t_ref: (c_out, C) in matmul dtype; out_ref: (1, c_out, HW).
    The per-slab x*s multiply is a VPU op fully hidden under the HBM-bound
    slab read/write, and avoids any in-kernel (C,1)->(1,C) relayout.
    """
    xf = x_ref[0].astype(jnp.float32)                                   # (C, HW)
    pooled = jnp.sum(xf, axis=-1, keepdims=True) * inv_hw               # (C, 1)
    h = jnp.dot(w1t_ref[...], pooled, preferred_element_type=jnp.float32) + b1c_ref[...]
    h = jnp.maximum(h, 0.0)                                             # (mid, 1)
    s = jnp.dot(w2t_ref[...], h, preferred_element_type=jnp.float32) + b2c_ref[...]
    s = _hsigmoid(s)                                                    # (C, 1)
    y = (xf * s).astype(w3t_ref.dtype)                                  # (C, HW)
    out = jnp.dot(w3t_ref[...], y, preferred_element_type=jnp.float32)  # (c_out, HW)
    out_ref[0] = jnp.maximum(out + b3c_ref[...], 0.0).astype(out_ref.dtype)


def _fused_scale_kernel(x_ref, w1t_ref, b1c_ref, w2t_ref, b2c_ref, out_ref, *, inv_hw):
    """Whole SE layer for one batch element (out_channels is None path)."""
    xf = x_ref[0].astype(jnp.float32)                                   # (C, HW)
    pooled = jnp.sum(xf, axis=-1, keepdims=True) * inv_hw               # (C, 1)
    h = jnp.dot(w1t_ref[...], pooled, preferred_element_type=jnp.float32) + b1c_ref[...]
    h = jnp.maximum(h, 0.0)
    s = _hsigmoid(jnp.dot(w2t_ref[...], h, preferred_element_type=jnp.float32) + b2c_ref[...])
    out_ref[0] = (xf * s).astype(out_ref.dtype)


def _pool_kernel(x_ref, sum_ref, *, thw, hw_total, ragged):
    """Accumulate per-channel sums over HW tiles.  x_ref: (1,C,thw); sum_ref: (1,C,1)."""
    @pl.when(pl.program_id(1) == 0)
    def _init():
        sum_ref[...] = jnp.zeros_like(sum_ref)

    x = x_ref[...].astype(jnp.float32)          # f32 accumulation even for bf16 x
    if ragged:
        pos = pl.program_id(1) * thw + jax.lax.broadcasted_iota(jnp.int32, x.shape, 2)
        x = jnp.where(pos < hw_total, x, 0.0)   # mask the out-of-range tail lanes
    sum_ref[...] += jnp.sum(x, axis=-1, keepdims=True)


def _apply_conv_kernel(pooled_ref, w1_ref, b1_ref, w2_ref, b2_ref,
                       w3t_ref, b3c_ref, x_ref, out_ref, w3s_ref, *, inv_hw):
    """Streamed conv_last pass: excite FCs + w3 fold once per n, matmul per tile.

    pooled_ref: (1,1,C) channel sums; row-oriented w1 (C,mid) / w2 (mid,C);
    w3t_ref: (c_out, C) matmul dtype; x_ref: (1,C,thw); out_ref: (1,c_out,thw);
    w3s_ref: VMEM scratch (c_out, C) holding the scale-folded weight.
    """
    @pl.when(pl.program_id(1) == 0)
    def _fold():                                 # once per batch element
        p = pooled_ref[0] * inv_hw                                       # (1, C) mean
        h = jnp.dot(p, w1_ref[...], preferred_element_type=jnp.float32) + b1_ref[...]
        h = jnp.maximum(h, 0.0)                                          # (1, mid)
        s = jnp.dot(h, w2_ref[...], preferred_element_type=jnp.float32) + b2_ref[...]
        s = _hsigmoid(s)                                                 # (1, C)
        # Fold the per-channel scale into the weight: O(c_out*C), hoisted out
        # of the HW-tile loop.
        w3s_ref[...] = (w3t_ref[...] * s).astype(w3s_ref.dtype)

    out = jnp.dot(w3s_ref[...], x_ref[0].astype(w3s_ref.dtype),
                  preferred_element_type=jnp.float32)                    # (c_out, thw)
    out_ref[0] = jnp.maximum(out + b3c_ref[...], 0.0).astype(out_ref.dtype)


def _apply_scale_kernel(pooled_ref, w1t_ref, b1c_ref, w2t_ref, b2c_ref,
                        x_ref, out_ref, s_ref, *, inv_hw):
    """Streamed out_channels-is-None pass: excite once per n (scratch), scale per tile."""
    @pl.when(pl.program_id(1) == 0)
    def _excite():
        p = pooled_ref[0] * inv_hw                                       # (C, 1) mean
        h = jnp.dot(w1t_ref[...], p, preferred_element_type=jnp.float32) + b1c_ref[...]
        h = jnp.maximum(h, 0.0)                                          # (mid, 1)
        s = jnp.dot(w2t_ref[...], h, preferred_element_type=jnp.float32) + b2c_ref[...]
        s_ref[...] = _hsigmoid(s)                                        # (C, 1)

    out_ref[0] = (x_ref[0] * s_ref[...]).astype(out_ref.dtype)


# ---------------------------------------------------------------------------
# Wrapper helpers
# ---------------------------------------------------------------------------

def _pick_hw_tile(hw, bytes_per_lane, budget):
    """Largest lane tile whose (double-buffered) lane-scaled blocks fit `budget`.

    Returns (thw, num_tiles, ragged).  Prefers a multiple-of-128 divisor of hw;
    otherwise uses pl.cdiv + a masked ragged tail.  Never returns an unbounded
    full-extent block (fixes the old fallback)."""
    max_thw = max(128, int(budget) // max(int(bytes_per_lane), 1))
    if hw <= max_thw:
        return hw, 1, False
    cap = (max_thw // 128) * 128
    t = cap
    while t >= 128:
        if hw % t == 0:
            return t, hw // t, False
        t -= 128
    return cap, pl.cdiv(hw, cap), True


def _compiler_params(semantics, vmem_estimate):
    # Explicit scoped-VMEM limit sized to the actual blocks (+ headroom):
    # raises v5e's 16 MiB scoped default, stays under v7x's 64 MiB physical.
    limit = int(min(max(int(vmem_estimate) + (8 << 20), 32 << 20), 56 << 20))
    return pltpu.CompilerParams(dimension_semantics=semantics,
                                vmem_limit_bytes=limit)


def prepare_params(params, matmul_dtype=jnp.bfloat16):
    """One-time layout prep (call once, outside the per-step wrapper):
    column-oriented copies of the excite FCs and a pre-transposed, pre-cast w3."""
    if "_prepared" in params:
        return params
    p = dict(params)
    C, mid = p["w1"].shape
    p["b1"] = p["b1"].reshape(1, mid)
    p["b2"] = p["b2"].reshape(1, C)
    p["w1t"] = p["w1"].T                          # (mid, C)
    p["b1c"] = p["b1"].reshape(mid, 1)
    p["w2t"] = p["w2"].T                          # (C, mid)
    p["b2c"] = p["b2"].reshape(C, 1)
    if "w3" in p:
        c_out = p["w3"].shape[1]
        p["w3t"] = p["w3"].T.astype(matmul_dtype)  # (c_out, C), bf16: 2x less DMA/VMEM
        p["b3c"] = p["b3"].reshape(c_out, 1).astype(jnp.float32)
    p["_prepared"] = True
    return p


# ---------------------------------------------------------------------------
# Wrapper
# ---------------------------------------------------------------------------

def se_layer_v2(x_nchw, params, apply_conv_last=True,
                matmul_dtype=jnp.bfloat16,
                fuse_vmem_bytes=16 * 1024 * 1024,     # full-fusion gate (v7x-safe; ~24 MiB is fine on v5e/v6e)
                hw_tile_vmem_bytes=8 * 1024 * 1024):  # streamed-path in+out tile budget
    """x_nchw: (N, C, H, W).  params: prepared dict (see prepare_params).  Returns NCHW."""
    params = prepare_params(params, matmul_dtype=matmul_dtype)   # no-op if already prepared

    N, C, H, W = x_nchw.shape
    HW = H * W
    mid = params["w1"].shape[1]
    conv_last = apply_conv_last and ("w3t" in params)
    c_out = params["w3t"].shape[0] if conv_last else C
    out_dtype = x_nchw.dtype
    x_bytes = x_nchw.dtype.itemsize
    o_bytes = jnp.dtype(out_dtype).itemsize
    inv_hw = 1.0 / HW

    # Free, metadata-only reshape: channels on sublanes, HW on lanes.
    x = x_nchw.reshape(N, C, HW)

    # Tiny resident operands (double-buffered; pl.Buffered(1) would halve this
    # but is skipped for version safety -- these stay small with bf16 w3t).
    resident = 2 * 4 * (C * mid + mid + mid * C + C)
    if conv_last:
        resident += 2 * (params["w3t"].dtype.itemsize * c_out * C + 4 * c_out)

    # -------- fully fused path: x read from HBM exactly once ----------------
    fused_est = 2 * HW * (C * x_bytes + c_out * o_bytes) + 2 * C * HW * 4  # blocks + f32 temps
    if fused_est <= fuse_vmem_bytes:
        const = lambda n: (0, 0)
        if conv_last:
            out = pl.pallas_call(
                functools.partial(_fused_conv_kernel, inv_hw=inv_hw),
                out_shape=jax.ShapeDtypeStruct((N, c_out, HW), out_dtype),
                grid_spec=pltpu.PrefetchScalarGridSpec(
                    num_scalar_prefetch=0, grid=(N,),
                    in_specs=[
                        pl.BlockSpec((1, C, HW), lambda n: (n, 0, 0)),
                        pl.BlockSpec((mid, C), const),
                        pl.BlockSpec((mid, 1), const),
                        pl.BlockSpec((C, mid), const),
                        pl.BlockSpec((C, 1), const),
                        pl.BlockSpec((c_out, C), const),
                        pl.BlockSpec((c_out, 1), const),
                    ],
                    out_specs=pl.BlockSpec((1, c_out, HW), lambda n: (n, 0, 0)),
                ),
                compiler_params=_compiler_params(("parallel",), fused_est + resident),
            )(x, params["w1t"], params["b1c"], params["w2t"], params["b2c"],
              params["w3t"], params["b3c"])
            return out.reshape(N, c_out, H, W)

        out = pl.pallas_call(
            functools.partial(_fused_scale_kernel, inv_hw=inv_hw),
            out_shape=jax.ShapeDtypeStruct((N, C, HW), out_dtype),
            grid_spec=pltpu.PrefetchScalarGridSpec(
                num_scalar_prefetch=0, grid=(N,),
                in_specs=[
                    pl.BlockSpec((1, C, HW), lambda n: (n, 0, 0)),
                    pl.BlockSpec((mid, C), const),
                    pl.BlockSpec((mid, 1), const),
                    pl.BlockSpec((C, mid), const),
                    pl.BlockSpec((C, 1), const),
                ],
                out_specs=pl.BlockSpec((1, C, HW), lambda n: (n, 0, 0)),
            ),
            compiler_params=_compiler_params(("parallel",), fused_est + resident),
        )(x, params["w1t"], params["b1c"], params["w2t"], params["b2c"])
        return out.reshape(N, C, H, W)

    # -------- streamed path: pool pass + excite-folded apply pass -----------
    per_lane = 2 * (C * x_bytes + c_out * o_bytes)              # double-buffered in+out
    thw, T, ragged = _pick_hw_tile(HW, per_lane, hw_tile_vmem_bytes)

    pool_est = 2 * C * thw * x_bytes + 8 * C
    pooled = pl.pallas_call(
        functools.partial(_pool_kernel, thw=thw, hw_total=HW, ragged=ragged),
        out_shape=jax.ShapeDtypeStruct((N, C, 1), jnp.float32),
        grid_spec=pltpu.PrefetchScalarGridSpec(
            num_scalar_prefetch=0, grid=(N, T),
            in_specs=[pl.BlockSpec((1, C, thw), lambda n, t: (n, 0, t))],
            out_specs=pl.BlockSpec((1, C, 1), lambda n, t: (n, 0, 0)),
        ),
        # TODO(synk): on v7x with N == 1, add a second "parallel" split of the
        # HW reduction (two partial sums) so both TensorCores are used.
        compiler_params=_compiler_params(("parallel", "arbitrary"), pool_est),
    )(x)

    const2 = lambda n, t: (0, 0)
    apply_est = thw * per_lane + resident

    if conv_last:
        apply_est += params["w3t"].dtype.itemsize * c_out * C     # w3s scratch
        pooled_row = pooled.reshape(N, 1, C)                      # free: (N,C,1)->(N,1,C)
        out = pl.pallas_call(
            functools.partial(_apply_conv_kernel, inv_hw=inv_hw),
            out_shape=jax.ShapeDtypeStruct((N, c_out, HW), out_dtype),
            grid_spec=pltpu.PrefetchScalarGridSpec(
                num_scalar_prefetch=0, grid=(N, T),
                in_specs=[
                    pl.BlockSpec((1, 1, C), lambda n, t: (n, 0, 0)),
                    pl.BlockSpec((C, mid), const2),
                    pl.BlockSpec((1, mid), const2),
                    pl.BlockSpec((mid, C), const2),
                    pl.BlockSpec((1, C), const2),
                    pl.BlockSpec((c_out, C), const2),
                    pl.BlockSpec((c_out, 1), const2),
                    pl.BlockSpec((1, C, thw), lambda n, t: (n, 0, t)),
                ],
                out_specs=pl.BlockSpec((1, c_out, thw), lambda n, t: (n, 0, t)),
                scratch_shapes=[pltpu.VMEM((c_out, C), params["w3t"].dtype)],
            ),
            compiler_params=_compiler_params(("parallel", "arbitrary"), apply_est),
        )(pooled_row, params["w1"], params["b1"], params["w2"], params["b2"],
          params["w3t"], params["b3c"], x)
        return out.reshape(N, c_out, H, W)

    out = pl.pallas_call(
        functools.partial(_apply_scale_kernel, inv_hw=inv_hw),
        out_shape=jax.ShapeDtypeStruct((N, C, HW), out_dtype),
        grid_spec=pltpu.PrefetchScalarGridSpec(
            num_scalar_prefetch=0, grid=(N, T),
            in_specs=[
                pl.BlockSpec((1, C, 1), lambda n, t: (n, 0, 0)),
                pl.BlockSpec((mid, C), const2),
                pl.BlockSpec((mid, 1), const2),
                pl.BlockSpec((C, mid), const2),
                pl.BlockSpec((C, 1), const2),
                pl.BlockSpec((1, C, thw), lambda n, t: (n, 0, t)),
            ],
            out_specs=pl.BlockSpec((1, C, thw), lambda n, t: (n, 0, t)),
            scratch_shapes=[pltpu.VMEM((C, 1), jnp.float32)],
        ),
        compiler_params=_compiler_params(("parallel", "arbitrary"), apply_est),
    )(pooled, params["w1t"], params["b1c"], params["w2t"], params["b2c"], x)
    return out.reshape(N, C, H, W)


# ---------------------------------------------------------------------------
# Params + pure-JAX reference + test
# ---------------------------------------------------------------------------

def init_params(key, channels, out_channels, ratio=16):
    """Synthetic weights. 1x1 conv (out,in,1,1) stored as (in,out)."""
    mid = make_divisible(channels // ratio, 8)
    k1, k2, k3, k4, k5, k6 = jax.random.split(key, 6)
    scale = 0.1
    return {
        "w1": scale * jax.random.normal(k1, (channels, mid), jnp.float32),
        "b1": scale * jax.random.normal(k2, (1, mid), jnp.float32),
        "w2": scale * jax.random.normal(k3, (mid, channels), jnp.float32),
        "b2": scale * jax.random.normal(k4, (1, channels), jnp.float32),
        "w3": scale * jax.random.normal(k5, (channels, out_channels), jnp.float32),
        "b3": scale * jax.random.normal(k6, (1, out_channels), jnp.float32),
    }


def se_layer_v2_ref(x_nchw, params, apply_conv_last=True):
    """Pure-JAX f32 reference with the module's NCHW semantics."""
    pooled = jnp.mean(x_nchw, axis=(2, 3))                               # (N, C)
    h = jnp.maximum(pooled @ params["w1"] + params["b1"], 0.0)
    s = jnp.clip((h @ params["w2"] + params["b2"] + 3.0) / 6.0, 0.0, 1.0)
    y = x_nchw * s[:, :, None, None]
    if not apply_conv_last:
        return y
    out = jnp.einsum("nchw,co->nohw", y, params["w3"])
    out = out + params["b3"].reshape(1, -1, 1, 1)
    return jnp.maximum(out, 0.0)


if __name__ == "__main__":
    key = jax.random.PRNGKey(0)
    kx, kp = jax.random.split(key)

    N, C, H, W = 2, 32, 16, 16        # channels=32, ratio=16 -> mid = make_divisible(2, 8) = 8
    out_channels = 16

    x = jax.random.normal(kx, (N, C, H, W), jnp.float32)
    params = prepare_params(init_params(kp, C, out_channels, ratio=16))

    # 1) fully fused conv_last path (default budgets -> one kernel, x read once)
    y = jax.block_until_ready(se_layer_v2(x, params))
    y_ref = se_layer_v2_ref(x, params)
    assert y.shape == (N, out_channels, H, W)
    assert jnp.allclose(y, y_ref, atol=2e-2, rtol=2e-2), "fused conv_last path mismatch"

    # 2) fully fused out_channels-is-None path (pure f32 -> tight tolerance)
    y2 = jax.block_until_ready(se_layer_v2(x, params, apply_conv_last=False))
    y2_ref = se_layer_v2_ref(x, params, apply_conv_last=False)
    assert y2.shape == (N, C, H, W)
    assert jnp.allclose(y2, y2_ref, atol=1e-4, rtol=1e-4), "fused scale-only path mismatch"

    # 3) streamed 2-pass path (tiny budgets force HW tiling; thw=128, T=2)
    y3 = jax.block_until_ready(
        se_layer_v2(x, params, fuse_vmem_bytes=1, hw_tile_vmem_bytes=64 * 1024))
    assert jnp.allclose(y3, y_ref, atol=2e-2, rtol=2e-2), "streamed conv_last path mismatch"

    # 4) streamed path with a ragged (non-multiple-of-128) HW tail: 13x13 = 169
    xr = jax.random.normal(kx, (N, C, 13, 13), jnp.float32)
    yr = jax.block_until_ready(
        se_layer_v2(xr, params, fuse_vmem_bytes=1, hw_tile_vmem_bytes=48 * 1024))
    yr_ref = se_layer_v2_ref(xr, params)
    assert jnp.allclose(yr, yr_ref, atol=2e-2, rtol=2e-2), "ragged conv_last path mismatch"
    yr2 = jax.block_until_ready(
        se_layer_v2(xr, params, apply_conv_last=False,
                    fuse_vmem_bytes=1, hw_tile_vmem_bytes=48 * 1024))
    yr2_ref = se_layer_v2_ref(xr, params, apply_conv_last=False)
    assert jnp.allclose(yr2, yr2_ref, atol=1e-4, rtol=1e-4), "ragged scale-only path mismatch"

    # 5) bf16 input/output (halves the dominant HBM traffic); compare against
    #    the f32 reference evaluated on the bf16-rounded input.
    xb = x.astype(jnp.bfloat16)
    yb = jax.block_until_ready(se_layer_v2(xb, params))
    yb_ref = se_layer_v2_ref(xb.astype(jnp.float32), params)
    assert yb.dtype == jnp.bfloat16
    assert jnp.allclose(yb.astype(jnp.float32), yb_ref, atol=6e-2, rtol=6e-2), "bf16 path mismatch"

    print("KERNEL_OK")
</pallas_src>

<mosaic_0001>
module attributes {stable_mosaic.version = 11 : i64} {
  func.func @_fused_conv_kernel(%arg0: i32, %arg1: memref<1x32x256xf32, #tpu.memory_space<vmem>>, %arg2: memref<8x32xf32, #tpu.memory_space<vmem>>, %arg3: memref<8x1xf32, #tpu.memory_space<vmem>>, %arg4: memref<32x8xf32, #tpu.memory_space<vmem>>, %arg5: memref<32x1xf32, #tpu.memory_space<vmem>>, %arg6: memref<16x32xbf16, #tpu.memory_space<vmem>>, %arg7: memref<16x1xf32, #tpu.memory_space<vmem>>, %arg8: memref<1x16x256xf32, #tpu.memory_space<vmem>>) attributes {dimension_semantics = [#tpu.dimension_semantics<parallel>], iteration_bounds = array<i64: 2>, scalar_prefetch = 0 : i64, scratch_operands = 0 : i64, tpu.core_type = #tpu.core_type<tc>, window_params = [{transform_indices = @transform_0, window_bounds = array<i64: 1, 32, 256>}, {pipeline_mode = #tpu.pipeline_mode<synchronous>, transform_indices = @transform_1, window_bounds = array<i64: 8, 32>}, {pipeline_mode = #tpu.pipeline_mode<synchronous>, transform_indices = @transform_2, window_bounds = array<i64: 8, 1>}, {pipeline_mode = #tpu.pipeline_mode<synchronous>, transform_indices = @transform_3, window_bounds = array<i64: 32, 8>}, {pipeline_mode = #tpu.pipeline_mode<synchronous>, transform_indices = @transform_4, window_bounds = array<i64: 32, 1>}, {pipeline_mode = #tpu.pipeline_mode<synchronous>, transform_indices = @transform_5, window_bounds = array<i64: 16, 32>}, {pipeline_mode = #tpu.pipeline_mode<synchronous>, transform_indices = @transform_6, window_bounds = array<i64: 16, 1>}, {transform_indices = @transform_7, window_bounds = array<i64: 1, 16, 256>}]} {
    %c0 = arith.constant 0 : index
    %c0_0 = arith.constant 0 : index
    %c0_1 = arith.constant 0 : index
    %0 = vector.load %arg1[%c0, %c0_0, %c0_1] : memref<1x32x256xf32, #tpu.memory_space<vmem>>, vector<1x32x256xf32>
    %1 = vector.shape_cast %0 : vector<1x32x256xf32> to vector<32x256xf32>
    %cst = arith.constant dense<0.000000e+00> : vector<32xf32>
    %2 = vector.multi_reduction <add>, %1, %cst [1] : vector<32x256xf32> to vector<32xf32>
    %3 = vector.shape_cast %2 : vector<32xf32> to vector<32x1xf32>
    %cst_2 = arith.constant 3.906250e-03 : f32
    %4 = vector.broadcast %cst_2 : f32 to vector<32x1xf32>
    %5 = arith.mulf %3, %4 : vector<32x1xf32>
    %c0_3 = arith.constant 0 : index
    %c0_4 = arith.constant 0 : index
    %6 = vector.load %arg2[%c0_3, %c0_4] : memref<8x32xf32, #tpu.memory_space<vmem>>, vector<8x32xf32>
    %cst_5 = arith.constant dense<0.000000e+00> : vector<8x1xf32>
    %7 = tpu.matmul %6, %5, %cst_5 {dimension_numbers = #tpu.dot_dimension_numbers<[1], [0], [0], [1], [0, 0, 1, 1], [], []>} : vector<8x32xf32>, vector<32x1xf32>, vector<8x1xf32> -> vector<8x1xf32>
    %c0_6 = arith.constant 0 : index
    %c0_7 = arith.constant 0 : index
    %8 = vector.load %arg3[%c0_6, %c0_7] : memref<8x1xf32, #tpu.memory_space<vmem>>, vector<8x1xf32>
    %9 = arith.addf %7, %8 : vector<8x1xf32>
    %cst_8 = arith.constant 0.000000e+00 : f32
    %10 = vector.broadcast %cst_8 : f32 to vector<8x1xf32>
    %11 = arith.maximumf %9, %10 : vector<8x1xf32>
    %c0_9 = arith.constant 0 : index
    %c0_10 = arith.constant 0 : index
    %12 = vector.load %arg4[%c0_9, %c0_10] : memref<32x8xf32, #tpu.memory_space<vmem>>, vector<32x8xf32>
    %cst_11 = arith.constant dense<0.000000e+00> : vector<32x1xf32>
    %13 = tpu.matmul %12, %11, %cst_11 {dimension_numbers = #tpu.dot_dimension_numbers<[1], [0], [0], [1], [0, 0, 1, 1], [], []>} : vector<32x8xf32>, vector<8x1xf32>, vector<32x1xf32> -> vector<32x1xf32>
    %c0_12 = arith.constant 0 : index
    %c0_13 = arith.constant 0 : index
    %14 = vector.load %arg5[%c0_12, %c0_13] : memref<32x1xf32, #tpu.memory_space<vmem>>, vector<32x1xf32>
    %15 = arith.addf %13, %14 : vector<32x1xf32>
    %cst_14 = arith.constant 3.000000e+00 : f32
    %16 = vector.broadcast %cst_14 : f32 to vector<32x1xf32>
    %17 = arith.addf %15, %16 : vector<32x1xf32>
    %cst_15 = arith.constant 0.166666672 : f32
    %18 = vector.broadcast %cst_15 : f32 to vector<32x1xf32>
    %19 = arith.mulf %17, %18 : vector<32x1xf32>
    %cst_16 = arith.constant 0.000000e+00 : f32
    %cst_17 = arith.constant 1.000000e+00 : f32
    %20 = vector.broadcast %cst_16 : f32 to vector<32x1xf32>
    %21 = arith.maximumf %20, %19 : vector<32x1xf32>
    %22 = vector.broadcast %cst_17 : f32 to vector<32x1xf32>
    %23 = arith.minimumf %22, %21 : vector<32x1xf32>
    %24 = vector.broadcast %23 : vector<32x1xf32> to vector<32x256xf32>
    %25 = arith.mulf %1, %24 : vector<32x256xf32>
    %26 = arith.truncf %25 : vector<32x256xf32> to vector<32x256xbf16>
    %c0_18 = arith.constant 0 : index
    %c0_19 = arith.constant 0 : index
    %27 = vector.load %arg6[%c0_18, %c0_19] : memref<16x32xbf16, #tpu.memory_space<vmem>>, vector<16x32xbf16>
    %cst_20 = arith.constant dense<0.000000e+00> : vector<16x256xf32>
    %28 = tpu.matmul %27, %26, %cst_20 {dimension_numbers = #tpu.dot_dimension_numbers<[1], [0], [0], [1], [0, 0, 1, 1], [], []>} : vector<16x32xbf16>, vector<32x256xbf16>, vector<16x256xf32> -> vector<16x256xf32>
    %c0_21 = arith.constant 0 : index
    %c0_22 = arith.constant 0 : index
    %29 = vector.load %arg7[%c0_21, %c0_22] : memref<16x1xf32, #tpu.memory_space<vmem>>, vector<16x1xf32>
    %30 = vector.broadcast %29 : vector<16x1xf32> to vector<16x256xf32>
    %31 = arith.addf %28, %30 : vector<16x256xf32>
    %cst_23 = arith.constant 0.000000e+00 : f32
    %32 = vector.broadcast %cst_23 : f32 to vector<16x256xf32>
    %33 = arith.maximumf %31, %32 : vector<16x256xf32>
    %c0_24 = arith.constant 0 : index
    %c0_25 = arith.constant 0 : index
    %c0_26 = arith.constant 0 : index
    %34 = vector.load %arg8[%c0_24, %c0_25, %c0_26] : memref<1x16x256xf32, #tpu.memory_space<vmem>>, vector<1x16x256xf32>
    %35 = vector.shape_cast %34 : vector<1x16x256xf32> to vector<16x256xf32>
    %36 = vector.shape_cast %33 : vector<16x256xf32> to vector<1x16x256xf32>
    tpu.vector_store %arg8[%c0_24, %c0_25, %c0_26], %36 {strides = array<i32>} : memref<1x16x256xf32, #tpu.memory_space<vmem>>, vector<1x16x256xf32>,
    return
  }
  func.func @transform_0(%arg0: i32) -> (i32, i32, i32) {
    %c0_i32 = arith.constant 0 : i32
    %c0_i32_0 = arith.constant 0 : i32
    %c0_i32_1 = arith.constant 0 : i32
    return %arg0, %c0_i32, %c0_i32_0 : i32, i32, i32
  }
  func.func @transform_1(%arg0: i32) -> (i32, i32) {
    %c0_i32 = arith.constant 0 : i32
    %c0_i32_0 = arith.constant 0 : i32
    %c0_i32_1 = arith.constant 0 : i32
    return %c0_i32, %c0_i32_0 : i32, i32
  }
  func.func @transform_2(%arg0: i32) -> (i32, i32) {
    %c0_i32 = arith.constant 0 : i32
    %c0_i32_0 = arith.constant 0 : i32
    %c0_i32_1 = arith.constant 0 : i32
    return %c0_i32, %c0_i32_0 : i32, i32
  }
  func.func @transform_3(%arg0: i32) -> (i32, i32) {
    %c0_i32 = arith.constant 0 : i32
    %c0_i32_0 = arith.constant 0 : i32
    %c0_i32_1 = arith.constant 0 : i32
    return %c0_i32, %c0_i32_0 : i32, i32
  }
  func.func @transform_4(%arg0: i32) -> (i32, i32) {
    %c0_i32 = arith.constant 0 : i32
    %c0_i32_0 = arith.constant 0 : i32
    %c0_i32_1 = arith.constant 0 : i32
    return %c0_i32, %c0_i32_0 : i32, i32
  }
  func.func @transform_5(%arg0: i32) -> (i32, i32) {
    %c0_i32 = arith.constant 0 : i32
    %c0_i32_0 = arith.constant 0 : i32
    %c0_i32_1 = arith.constant 0 : i32
    return %c0_i32, %c0_i32_0 : i32, i32
  }
  func.func @transform_6(%arg0: i32) -> (i32, i32) {
    %c0_i32 = arith.constant 0 : i32
    %c0_i32_0 = arith.constant 0 : i32
    %c0_i32_1 = arith.constant 0 : i32
    return %c0_i32, %c0_i32_0 : i32, i32
  }
  func.func @transform_7(%arg0: i32) -> (i32, i32, i32) {
    %c0_i32 = arith.constant 0 : i32
    %c0_i32_0 = arith.constant 0 : i32
    %c0_i32_1 = arith.constant 0 : i32
    return %arg0, %c0_i32, %c0_i32_0 : i32, i32, i32
  }
}

</mosaic_0001>

<bundles_post_ra>
// kernel: tpu_custom_call.1
= control target key start
LH: loop header
LB: loop body
LE: loop exit
PB: predicated region body
PF: predicated region fallthrough
CT: control target
= control target key end

     0   :  { %12 = vsyncpa [#allocation3], 0  ;;  %s1024_s0 = inlined_call_operand.hbm [shape: f32[2,32,256], index: 0, kind: input, shape index: {}]   ;;  %s1025_s1 = inlined_call_operand.vmem [shape: f32[8,32], index: 1, kind: input, shape index: {}]   ;;  %s1026_s2 = inlined_call_operand.vmem [shape: f32[8,1], index: 2, kind: input, shape index: {}]   ;;  %s1027_s3 = inlined_call_operand.vmem [shape: f32[32,8], index: 3, kind: input, shape index: {}]   ;;  %s1028_s4 = inlined_call_operand.vmem [shape: f32[32,1], index: 4, kind: input, shape index: {}]   ;;  %s1029_s5 = inlined_call_operand.vmem [shape: bf16[16,32], index: 5, kind: input, shape index: {}]   ;;  %s1030_s6 = inlined_call_operand.vmem [shape: f32[16,1], index: 6, kind: input, shape index: {}]   ;;  %s1031_s7 = inlined_call_operand.hbm [shape: f32[2,16,256], index: 7, kind: output, shape index: {}]  }
   0x1   :  { %14 = vsyncpa [#allocation3 + $0x1], 0 }
   0x2   :  { %15 = vsyncpa [#allocation4], 0 }
   0x3   :  { %17 = vsyncpa [#allocation4 + $0x1], 0  ;;  %s822_s24 = smov 0   ;;  %s824_s25 = smov 0  }
   0x4   :  { %s826_s26 = smov 0   ;;  %s828_s27 = smov 0  }
   0x5 LB: > { %s843_s28 = sadd.s32 4294967295, %s775_s27   ;;  %s596_s29 = sadd.s32 4294967294, %s775_s27   ;;  %s775_s27 = sphi %s828_s27, %s1043_s27   ;;  %s771_s26 = sphi %s826_s26, %s1042_s26   ;;  %s767_s25 = sphi %s824_s25, %s1041_s25   ;;  %s763_s24 = sphi %s822_s24, %s1040_s24  }
   0x6   : > { %s847_s30 = sadd.s32 1, %s775_s27   ;;  %s30_s8 = sadd.s32 1, %s771_s26 }
   0x7   : > { %s27_s9 = ssub.s32 %s775_s27, %s847_s30  ;;  %p37_p0 = scmp.ne.s32.totalorder %s771_s26, %s767_s25 }
   0x8   : > { %p28_p1 = scmp.eq.s32.totalorder %s27_s9, 0  ;;  %p38_p2 = scmp.eq.s32.totalorder %s775_s27, 0 }
   0x9   : > { %p43_p3 = scmp.ne.s32.totalorder %s767_s25, %s763_s24  ;;  %p44_p4 = scmp.eq.s32.totalorder %s843_s28, 0 }
   0xa   : > { %s859_s10 = scalar_select %p28_p1, %s771_s26, %s30_s8  }
   0xb   : > { %p861_p5 = por %p38_p2, %p37_p0  ;;  %p865_p6 = por %p44_p4, %p43_p3 }
   0xc   : > { %1032 = sst [smem:[#allocation8_spill]] %s859_s10  ;;  %p193_p7 = scmp.eq.s32.totalorder %s843_s28, 1 }
   0xd   : > { %p199_p8 = scmp.eq.s32.totalorder %s596_s29, 1  ;;  %p637_p10 = scmp.lt.s32.totalorder %s775_s27, 2 }
   0xe   : > { %p872_p11 = por %p193_p7, %p37_p0  ;;  %s237_s15 = sand.u32 1, %s771_s26  }
   0xf   : > { %p876_p12 = por %p199_p8, %p43_p3  ;;  %s621_s16 = sshll.u32 %s775_s27, 6 }
  0x10   : > { %s599_s17 = sshll.u32 %s237_s15, 6  ;;  %s246_s20 = scalar_lea.hbm %s1024_s0, %s621_s16 }
  0x11   : > { %s247_s21 = sshll.u32 %s246_s20, 4  ;;  %s241_s22 = scalar_lea.vmem [#allocation2], %s599_s17  ;;  %s248_s21 = int_to_ptr.hbm [resolvable:$true] %s247_s21 }
  0x12   : > { %s249_s23 = sshll.u32 %s241_s22, 4  ;;  %p887_p13 = pnand %p637_p10, %p861_p5  ;;  %s250_s23 = int_to_ptr.vmem [resolvable:$true] %s249_s23 }
  0x13   : > { %p602_p0 = scmp.ge.s32.totalorder %s775_s27, 1  ;;  %p257_p1 = scmp.lt.s32.totalorder %s775_s27, 3 }
  0x14   : > { %s238_s8 = scalar_lea.sflag [#allocation3], %s237_s15  ;;  %s679_s9 = sshra.s32 %s248_s21, 4  ;;  %s680_s9 = int_to_ptr.hbm [resolvable:$true] %s679_s9 }
  0x15   : > { %s681_s10 = scalar_lea.hbm %s680_s9, 64  ;;  %p683_p3 = pneg %p887_p13 }
  0x16   : > { %p682_p2 = scmp.ne.s32.totalorder %s680_s9, %s681_s10  ;;  %s686_s11 = scalar_lea.hbm %s1024_s0, 128 }
  0x17   : > { %p687_p5 = scmp.lt.s32.totalorder %s680_s9, %s1024_s0  ;;  %p688_p8 = scmp.lt.s32.totalorder %s686_s11, %s681_s10 }
  0x18   : > { %p684_p4 = pnand %p683_p3, %p682_p2 }
  0x19   : > { %p689_p10 = por %p688_p8, %p687_p5 }
  0x1a   : > { %p685_p7 = pneg %p684_p4 }
  0x1c   : > { %p690_p9 = pnand %p689_p10, %p685_p7 }
  0x1e   : > { %693 = shalt.err (!%p690_p9)
}
  0x1f   : > { %s777_s15 = smov 256   ;;  %s778_s20 = smov 16  }
  0x20   : > { %632 = dma.hbm_to_vmem [thread:$0]  (!%p887_p13), %s248_s21, 1024, %s250_s23, %s238_s8, %s777_s15, %s777_s15, %s778_s20  }
  0x21   : > { %p258_p2 = pnand %p602_p0, %p257_p1 }
  0x22   : > { %s908_s22 = sand.u32 (!%p258_p2), 1, %s767_s25  }
  0x23   : > { %261 = sbr.rel (%p258_p2) target bundleno = 713 (0x2c9), region = 48  ;;  %s603_s10 = sshll.u32 (!%p258_p2), %s908_s22, 6 }
  0x24   : > { %s264_s9 = scalar_lea.sflag (!%p258_p2), [#allocation3], %s908_s22  ;;  %s267_s16 = scalar_lea.vmem (!%p258_p2), [#allocation2], %s603_s10 }
  0x28   : > { %754 = dma.done.wait (%p865_p6), %s264_s9, 1024  }
  0x29   : > { %756 = vsyncadd (%p865_p6), %s264_s9, 4294966272  ;;  %v916_v0 = vld [vmem:[%s267_s16 + $0x30] sm:$0xff]  ;;  %v918_v1 = vld [vmem:[%s267_s16 + $0x38] sm:$0xff]  ;;  %vm326_vm0 = vcmask 261120   ;;  %vm359_vm1 = vcmask 64512   ;;  %v779_v29 = vmov 0  }
  0x2a   : > { %v920_v2 = vld [vmem:[%s267_s16 + $0x10] sm:$0xff]  ;;  %v317_v3 = vadd.f32 %v918_v1, %v916_v0  ;;  %v924_v4 = vld [vmem:[%s267_s16 + $0x18] sm:$0xff]  ;;  %v928_v6 = vld [vmem:[%s267_s16 + $0x20] sm:$0xff]  ;;  %678 = vset.pattern.permute.xlu1 %v779_v29  ;;  %677 = vset.pattern.permute.xlu0 %v779_v29  ;;  %s604_s9 = sshll.u32 %s908_s22, 5  ;;  %s729_s20 = scalar_lea.hbm %s1031_s7, 64 }
  0x2b   : > { %v311_v5 = vadd.f32 %v924_v4, %v920_v2  ;;  %v930_v7 = vld [vmem:[%s267_s16 + $0x28] sm:$0xff]  ;;  %v932_v8 = vld [vmem:[%s267_s16] sm:$0xff]  ;;  %v353_v27 = vld [vmem:[%s1027_s3 + $0x10] sm:$0xff]  ;;  %676 = vset.pattern.permute.xlu2 %v779_v29  ;;  %s298_s12 = scalar_lea.vmem [#allocation5], %s604_s9 }
  0x2c   : > { %318 = vadd.xlane.f32.xlu0 %v317_v3  ;;  %v934_v9 = vld [vmem:[%s267_s16 + $0x8] sm:$0xff]  ;;  %v314_v10 = vadd.f32 %v930_v7, %v928_v6  ;;  %v324_v20 = vld [vmem:[%s1025_s1] sm:$0xff]  ;;  %v354_v28 = vld [vmem:[%s1027_s3 + $0x18] sm:$0xff]  ;;  %s623_s16 = sshll.u32 %s843_s28, 5  ;;  %s520_s8 = sshll.u32 %s298_s12, 4  ;;  %s521_s8 = int_to_ptr.vmem [resolvable:$true] %s520_s8 }
  0x2d   : > { %312 = vadd.xlane.f32.xlu1 %v311_v5  ;;  %v308_v11 = vadd.f32 %v934_v9, %v932_v8  ;;  %v325_v21 = vld [vmem:[%s1026_s2] sm:$0xff]  ;;  %v352_v26 = vld [vmem:[%s1027_s3 + $0x8] sm:$0xff]  ;;  %v357_v40 = vld [vmem:[%s1028_s4 + $0x10] sm:$0xff]  ;;  %s519_s29 = scalar_lea.hbm %s1031_s7, %s623_s16  ;;  %s508_s28 = scalar_lea.sflag [#allocation4], %s908_s22 }
  0x2e   : > { %v351_v25 = vld [vmem:[%s1027_s3] sm:$0xff]  ;;  %v356_v31 = vld [vmem:[%s1028_s4 + $0x8] sm:$0xff]  ;;  %v358_v49 = vld [vmem:[%s1028_s4 + $0x18] sm:$0xff]  ;;  %s522_s17 = sshll.u32 %s519_s29, 4  ;;  %s523_s17 = int_to_ptr.hbm [resolvable:$true] %s522_s17 }
  0x2f   : > { %v355_v30 = vld [vmem:[%s1028_s4] sm:$0xff]  ;;  %v452_v59 = vld [vmem:[%s1030_s6 + $0x8] sm:$0xff]  ;;  %s723_s11 = sshra.s32 %s523_s17, 4  ;;  %s724_s11 = int_to_ptr.hbm [resolvable:$true] %s723_s11 }
  0x30   : > { %v451_v58 = vld [vmem:[%s1030_s6] sm:$0xff]  ;;  %s725_s18 = scalar_lea.hbm %s724_s11, 32  ;;  %p730_p0 = scmp.lt.s32.totalorder %s724_s11, %s1031_s7 }
  0x31   : > { %p726_p6 = scmp.ne.s32.totalorder %s724_s11, %s725_s18  ;;  %p731_p1 = scmp.lt.s32.totalorder %s729_s20, %s725_s18 }
  0x33   : > { %p727_p9 = pnand %p726_p6, %p872_p11  ;;  %p732_p3 = por %p731_p1, %p730_p0 }
  0x34   : > { %315 = vadd.xlane.f32.xlu0 %v314_v10 }
  0x35   : > { %309 = vadd.xlane.f32.xlu1 %v308_v11  ;;  %p728_p13 = pneg %p727_p9 }
  0x37   : > { %p733_p4 = pnand %p732_p3, %p728_p13 }
  0x9f   : > { %v319_v12 = vpop.xlane.xlu0 %318 }
  0xa0   : > { %v323_v13 = vmul.f32 0.00390625, %v319_v12  ;;  %v313_v14 = vpop.xlane.xlu1 %312 }
  0xa1   : > { %v321_v18 = vmul.f32 0.00390625, %v313_v14 }
  0xa2   : > { %342 = vmatpush.msra.mxu0 %v323_v13 }
  0xa7   : > { %v316_v15 = vpop.xlane.xlu0 %315 }
  0xa8   : > { %v322_v16 = vmul.f32 0.00390625, %v316_v15  ;;  %v310_v17 = vpop.xlane.xlu1 %309 }
  0xa9   : > { %v320_v19 = vmul.f32 0.00390625, %v310_v17 }
  0xaa   : > { %343 = vmatpush.msra.mxu0 %v322_v16 }
  0xac   : > { %344 = vmatpush.msra.mxu0 %v321_v18 }
  0xae   : > { %345 = vmatpush.msra.mxu0 %v320_v19 }
  0xaf   : > { %605 = vmatmul.msk.f32.vlgmr.msra.gmra.mxu0 %vm326_vm0, %v324_v20 }
 0x12c   : > { %v347_v22 = vpop.f32.mrf.mxu0 }
 0x12d   : > { %v348_v23 = vadd.f32 %v347_v22, %v325_v21 }
 0x12f   : > { %v350_v24 = vmax.f32 %v348_v23, 0.0 }
 0x131   : > { %387 = vmatpush.msrb.mxu0 %v350_v24  ;;  %624 = vmatpush.msra.mxu1 %v350_v24 }
 0x132   : > { %606 = vmatmul.msk.f32.vlgmr.msrb.gmra.mxu0 %vm359_vm1, %v351_v25  ;;  %607 = vmatmul.msk.f32.vlgmr.msra.gmra.mxu1 %vm359_vm1, %v352_v26 }
 0x13a   : > { %608 = vmatmul.msk.f32.gmra.mxu1 %vm359_vm1, %v353_v27 }
 0x142   : > { %609 = vmatmul.msk.f32.gmra.mxu1 %vm359_vm1, %v354_v28 }
 0x1af   : > { %v389_v32 = vpop.f32.mrf.mxu0  ;;  %v392_v33 = vpop.f32.mrf.mxu1 }
 0x1b0   : > { %v390_v34 = vadd.f32 %v389_v32, %v355_v30  ;;  %v393_v35 = vadd.f32 %v392_v33, %v356_v31 }
 0x1b2   : > { %v401_v36 = vadd.f32 3.0, %v390_v34  ;;  %v402_v37 = vadd.f32 3.0, %v393_v35 }
 0x1b4   : > { %v405_v38 = vmul.f32 0.16666667, %v401_v36  ;;  %v406_v39 = vmul.f32 0.16666667, %v402_v37 }
 0x1b6   : > { %v409_v41 = vmax.f32 %v405_v38, 0.0  ;;  %v410_v42 = vmax.f32 %v406_v39, 0.0 }
 0x1b7   : > { %v395_v43 = vpop.f32.mrf.mxu1 }
 0x1b8   : > { %v413_v44 = vmin.f32 %v409_v41, 1.0  ;;  %v414_v45 = vmin.f32 %v410_v42, 1.0  ;;  %v396_v46 = vadd.f32 %v395_v43, %v357_v40 }
 0x1ba   : > { %v403_v47 = vadd.f32 3.0, %v396_v46  ;;  %424 = vperm.xlu1 %678, %v414_v45   ;;  %419 = vperm.xlu0 %677, %v413_v44  }
 0x1bc   : > { %v407_v48 = vmul.f32 0.16666667, %v403_v47 }
 0x1be   : > { %v411_v50 = vmax.f32 %v407_v48, 0.0 }
 0x1bf   : > { %v398_v51 = vpop.f32.mrf.mxu1 }
 0x1c0   : > { %v399_v52 = vadd.f32 %v398_v51, %v358_v49  ;;  %v415_v53 = vmin.f32 %v411_v50, 1.0 }
 0x1c2   : > { %v404_v54 = vadd.f32 3.0, %v399_v52  ;;  %429 = vperm.xlu2 %676, %v415_v53  }
 0x1c4   : > { %v408_v55 = vmul.f32 0.16666667, %v404_v54 }
 0x1c6   : > { %v412_v56 = vmax.f32 %v408_v55, 0.0 }
 0x1c8   : > { %v416_v57 = vmin.f32 %v412_v56, 1.0 }
 0x1ca   : > { %434 = vperm.xlu2 %676, %v416_v57  }
 0x1d2   : > { %455 = vperm.xlu2 %676, %v451_v58  }
 0x1da   : > { %460 = vperm.xlu2 %676, %v452_v59  }
 0x21c   : > { %v430_v60 = vpop.permute.xlu2 %429 }
 0x21d   : > { %v441_v62 = vmul.f32 %v430_v60, %v928_v6  ;;  %v442_v63 = vmul.f32 %v430_v60, %v930_v7 }
 0x224   : > { %v435_v61 = vpop.permute.xlu2 %434 }
 0x225   : > { %v443_v3 = vmul.f32 %v435_v61, %v916_v0  ;;  %v444_v5 = vmul.f32 %v435_v61, %v918_v1  ;;  %v622_v1 = vld [vmem:[%s1029_s5] sm:$0xff] }
 0x227   : > { %v447_v10 = vpack.c.bf16 %v443_v3, %v441_v62  ;;  %v448_v11 = vpack.c.bf16 %v444_v5, %v442_v63 }
 0x229   : > { %477 = vmatpush.bf16.msra.mxu2 %v447_v10  ;;  %491 = vmatpush.bf16.msra.mxu3 %v448_v11 }
 0x22c   : > { %v425_v12 = vpop.permute.xlu1 %424  ;;  %v420_v15 = vpop.permute.xlu0 %419 }
 0x22d   : > { %v439_v13 = vmul.f32 %v425_v12, %v920_v2  ;;  %v440_v14 = vmul.f32 %v425_v12, %v924_v4  ;;  %v437_v6 = vmul.f32 %v420_v15, %v932_v8  ;;  %v438_v7 = vmul.f32 %v420_v15, %v934_v9  ;;  %v456_v2 = vpop.permute.xlu2 %455 }
 0x22f   : > { %v445_v16 = vpack.c.bf16 %v439_v13, %v437_v6  ;;  %v446_v0 = vpack.c.bf16 %v440_v14, %v438_v7 }
 0x231   : > { %478 = vmatpush.bf16.msra.mxu2 %v445_v16  ;;  %492 = vmatpush.bf16.msra.mxu3 %v446_v0 }
 0x234   : > { %614 = vmatmul.msk.bf16.vlgmr.msra.gmra.mxu2 %vm326_vm0, %v622_v1  ;;  %615 = vmatmul.msk.bf16.vlgmr.msra.gmra.mxu3 %vm326_vm0, %v622_v1 }
 0x235   : > { %v461_v20 = vpop.permute.xlu2 %460 }
 0x2b7   : > { %v480_v4 = vpop.f32.mrf.mxu2  ;;  %v494_v17 = vpop.f32.mrf.mxu3 }
 0x2b8   : > { %v481_v18 = vadd.f32 %v480_v4, %v456_v2  ;;  %v495_v8 = vadd.f32 %v494_v17, %v456_v2 }
 0x2ba   : > { %v499_v9 = vmax.f32 %v481_v18, 0.0  ;;  %v500_v19 = vmax.f32 %v495_v8, 0.0 }
 0x2bc   : > { %503 = vst [vmem:[%s298_s12] sm:$0xff] %v499_v9 }
 0x2bd   : > { %504 = vst [vmem:[%s298_s12 + $0x8] sm:$0xff] %v500_v19 }
 0x2bf   : > { %v482_v21 = vpop.f32.mrf.mxu2  ;;  %v496_v22 = vpop.f32.mrf.mxu3 }
 0x2c0   : > { %v483_v23 = vadd.f32 %v482_v21, %v461_v20  ;;  %v497_v24 = vadd.f32 %v496_v22, %v461_v20 }
 0x2c2   : > { %v501_v25 = vmax.f32 %v483_v23, 0.0  ;;  %v502_v26 = vmax.f32 %v497_v24, 0.0 }
 0x2c4   : > { %505 = vst [vmem:[%s298_s12 + $0x10] sm:$0xff] %v501_v25 }
 0x2c5   : > { %506 = vst [vmem:[%s298_s12 + $0x18] sm:$0xff] %v502_v26 }
 0x2c6   : > { %736 = shalt.err (!%p733_p4)
}
 0x2c7   : > { %s780_s22 = smov 256   ;;  %s781_s16 = smov 16  }
 0x2c8   : > { %627 = dma.vmem_to_hbm [thread:$0]  (%p872_p11), %s521_s8, 512, %s523_s17, %s508_s28, %s780_s22, %s780_s22, %s781_s16  }
 0x2c9 PF: > { %s537_s12 = sand.u32 1, %s763_s24   ;;  %p1038_p7 = scmp.ge.s32.totalorder %s775_s27, 2 }
 0x2ca   : > { %s538_s21 = scalar_lea.sflag [#allocation4], %s537_s12 }
 0x2cb   : > { %p634_p5 = pnand %p1038_p7, %p876_p12 }
 0x2cd   : > { %p635_p8 = pneg %p634_p5 }
 0x2cf   : > { %758 = dma.done.wait (%p635_p8), %s538_s21, 512  }
 0x2d0   : > { %760 = vsyncadd (%p635_p8), %s538_s21, 4294966784  ;;  %s1039_s23 = sld [smem:[#allocation8_spill]]  ;;  %p20_p10 = scmp.ge.s32.totalorder %s847_s30, 4  }
 0x2d1   : > { %s1040_s24 = smov %s767_s25  ;;  %s1041_s25 = smov %s771_s26 }
 0x2d2   : > { %s1043_s27 = smov %s847_s30  ;;  %22 = sbr.rel (!%p20_p10) target bundleno = 5 (0x5), region = 93 }
 0x2d6   : > { %s1042_s26 = smov %s1039_s23 }
 0x2d7   :  { %544 = vsyncpa [#allocation3], 1 }
 0x2d8   :  { %546 = vsyncpa [#allocation3 + $0x1], 1 }
 0x2d9   :  { %547 = vsyncpa [#allocation4], 1 }
 0x2da   :  { %549 = vsyncpa [#allocation4 + $0x1], 1 }

</bundles_post_ra>
